<compile_context>
chip_gen: v6e
topology: v6e:2x2x1
jax: 0.10.0
libtpu: 0.0.40
codegen_flags: <defaults>
</compile_context>

<pallas_src>
import math
import functools

import jax
import jax.numpy as jnp
from jax.experimental import pallas as pl
from jax.experimental.pallas import tpu as pltpu


def _mha_kernel(x_ref, wqkv_ref, wout_ref, o_ref, acc_ref, *,
                block_b, seq_len, embed_dim, head_dim_p):
    """One grid step = one (batch block, head) pair.

    x_ref    : (block_b, N, E)  VMEM, compute dtype (resident across the head axis)
    wqkv_ref : (E, 3*Dp)        VMEM, this head's [Q|K|V] weights (scale folded into Q)
    wout_ref : (Dp, E)          VMEM, this head's rows of w_out
    o_ref    : (block_b, N, E)  VMEM, written at the last head
    acc_ref  : (block_b, N, E)  VMEM f32 scratch accumulator
    """
    Bb, N, E, Dp = block_b, seq_len, embed_dim, head_dim_p
    h = pl.program_id(1)
    cdt = wqkv_ref.dtype  # MXU operand dtype (bf16 by default)

    @pl.when(h == 0)
    def _():
        acc_ref[...] = jnp.zeros_like(acc_ref)

    # ---- This head's QKV projection: one MXU matmul, K = E, output width 3*Dp. ----
    x2 = x_ref[...].reshape(Bb * N, E)                              # free leading-dim merge
    qkv = jnp.dot(x2, wqkv_ref[...],
                  preferred_element_type=jnp.float32)               # (Bb*N, 3*Dp) f32

    # Lane-aligned static slices (Dp is a multiple of 128); leading-dim reshapes are free.
    q = qkv[:, 0 * Dp:1 * Dp].astype(cdt).reshape(Bb, N, Dp)
    k = qkv[:, 1 * Dp:2 * Dp].astype(cdt).reshape(Bb, N, Dp)
    v = qkv[:, 2 * Dp:3 * Dp].astype(cdt).reshape(Bb, N, Dp)

    # ---- Scores: batched MXU op, contraction on the last dim of both operands (no k.T). ----
    s = jnp.einsum('bnd,bmd->bnm', q, k,
                   preferred_element_type=jnp.float32)              # (Bb, N, N) f32

    # ---- Numerically stable softmax over keys (f32); normalization deferred past PV. ----
    m = jnp.max(s, axis=-1, keepdims=True)
    p = jnp.exp(s - m)
    denom = jnp.sum(p, axis=-1, keepdims=True)

    pv = jnp.einsum('bnm,bmd->bnd', p.astype(cdt), v,
                    preferred_element_type=jnp.float32)             # (Bb, N, Dp) f32
    o_h = (pv * pl.reciprocal(denom, approx=True)).astype(cdt)      # normalize on N*Dp elems

    # ---- This head's slice of the output projection; accumulate over heads in f32. ----
    contrib = jnp.dot(o_h.reshape(Bb * N, Dp), wout_ref[...],
                      preferred_element_type=jnp.float32)           # (Bb*N, E) f32
    acc_ref[...] += contrib.reshape(Bb, N, E)

    @pl.when(h == pl.num_programs(1) - 1)
    def _():
        o_ref[...] = acc_ref[...].astype(o_ref.dtype)


def _pick_block_b(batch, seq_len, target_rows=256):
    """Largest divisor of `batch` that (a) keeps >=2 grid steps on the parallel batch axis
    (v7x has 2 TensorCores) and (b) keeps ~target_rows rows per QKV matmul."""
    limit = max(1, batch // 2)
    best = 1
    for cand in range(1, limit + 1):
        if batch % cand == 0 and cand * seq_len <= max(target_rows, seq_len):
            best = cand
    return best


def multi_head_self_attention(x, w_qkv, w_out, *, num_heads, block_b=None,
                              mxu_dtype=jnp.bfloat16):
    """x: (B, N, E); w_qkv: (E, 3E); w_out: (E, E). Returns (B, N, E) in x.dtype."""
    B, N, E = x.shape
    assert E % num_heads == 0, "embed_dim must be divisible by num_heads"
    H = num_heads
    D = E // H
    assert w_qkv.shape == (E, 3 * E)
    assert w_out.shape == (E, E)

    if block_b is None:
        block_b = _pick_block_b(B, N)
    assert B % block_b == 0

    compute_dtype = jnp.dtype(mxu_dtype)
    # Pad head dim to a lane-dense multiple of 128 (zero columns/rows are mathematically inert).
    Dp = ((D + 127) // 128) * 128

    # ---- Wrapper-side weight prep (one-time XLA ops): per-head, padded, scale folded. ----
    scale = 1.0 / math.sqrt(D)

    def split_heads_cols(w_part, col_scale=None):
        # w_part: (E, E) with head-major columns -> (H, E, Dp), zero-padded on the last dim.
        blocks = []
        for h in range(H):
            blk = w_part[:, h * D:(h + 1) * D]
            if col_scale is not None:
                blk = blk * col_scale
            if Dp != D:
                blk = jnp.pad(blk, ((0, 0), (0, Dp - D)))
            blocks.append(blk)
        return jnp.stack(blocks, axis=0)

    wq_h = split_heads_cols(w_qkv[:, 0 * E:1 * E], scale)       # scale folded into Q
    wk_h = split_heads_cols(w_qkv[:, 1 * E:2 * E])
    wv_h = split_heads_cols(w_qkv[:, 2 * E:3 * E])
    wqkv_heads = jnp.concatenate([wq_h, wk_h, wv_h], axis=2).astype(compute_dtype)  # (H, E, 3*Dp)

    wout_heads = w_out.reshape(H, D, E)
    if Dp != D:
        wout_heads = jnp.pad(wout_heads, ((0, 0), (0, Dp - D), (0, 0)))
    wout_heads = wout_heads.astype(compute_dtype)                                   # (H, Dp, E)

    x_in = x.astype(compute_dtype)

    kernel = functools.partial(_mha_kernel, block_b=block_b, seq_len=N,
                               embed_dim=E, head_dim_p=Dp)

    # ---- Explicit scoped-VMEM budget (rough upper bound on live bytes, with 2x headroom). ----
    csize = compute_dtype.itemsize
    xsize = jnp.dtype(x.dtype).itemsize
    est = (2 * block_b * N * E * csize            # x block (double-buffered)
           + 2 * block_b * N * E * xsize          # output block (double-buffered)
           + 2 * (E * 3 * Dp + Dp * E) * csize    # per-head weights (double-buffered)
           + block_b * N * E * 4                  # f32 accumulator scratch
           + block_b * N * 3 * Dp * 4             # qkv projection temp (f32)
           + 3 * block_b * N * N * 4              # scores / exp temps (f32)
           + 3 * block_b * N * Dp * 4             # q/k/v + pv temps
           + 2 * block_b * N * E * 4)             # out-proj temp
    vmem_limit = int(min(max(2 * est, 32 * 1024 * 1024), 64 * 1024 * 1024))

    # NOTE: with E < 128 the output block's last dim is not lane-dense (masked stores); real
    # model sizes (E >= 128) are naturally lane-dense, so no wrapper-side repacking is done here.
    return pl.pallas_call(
        kernel,
        out_shape=jax.ShapeDtypeStruct((B, N, E), x.dtype),
        grid_spec=pltpu.PrefetchScalarGridSpec(
            num_scalar_prefetch=0,
            grid=(B // block_b, H),
            in_specs=[
                pl.BlockSpec((block_b, N, E), lambda i, h: (i, 0, 0)),   # x: resident across heads
                pl.BlockSpec((None, E, 3 * Dp), lambda i, h: (h, 0, 0)),  # this head's QKV weights
                pl.BlockSpec((None, Dp, E), lambda i, h: (h, 0, 0)),      # this head's out-proj rows
            ],
            out_specs=pl.BlockSpec((block_b, N, E), lambda i, h: (i, 0, 0)),
            scratch_shapes=[pltpu.VMEM((block_b, N, E), jnp.float32)],
        ),
        compiler_params=pltpu.CompilerParams(
            dimension_semantics=("parallel", "arbitrary"),
            vmem_limit_bytes=vmem_limit),
    )(x_in, wqkv_heads, wout_heads)


def _reference(x, w_qkv, w_out, num_heads):
    """Pure-JAX reference matching the PyTorch forward (attn_mask=None)."""
    B, N, E = x.shape
    D = E // num_heads
    qkv = x @ w_qkv
    q, k, v = jnp.split(qkv, 3, axis=-1)
    q = q.reshape(B, N, num_heads, D).transpose(0, 2, 1, 3)
    k = k.reshape(B, N, num_heads, D).transpose(0, 2, 1, 3)
    v = v.reshape(B, N, num_heads, D).transpose(0, 2, 1, 3)
    scores = jnp.einsum("bhqd,bhkd->bhqk", q, k) / math.sqrt(D)
    attn = jax.nn.softmax(scores, axis=-1)
    out = jnp.einsum("bhqk,bhkd->bhqd", attn, v)
    out = out.transpose(0, 2, 1, 3).reshape(B, N, E)
    return out @ w_out


if __name__ == "__main__":
    # Small shapes consistent with the module: B=2, N=8 (sequence), E=32, heads=4.
    B, N, E, H = 2, 8, 32, 4

    key = jax.random.PRNGKey(0)
    kx, kqkv, kout = jax.random.split(key, 3)

    bound = 1.0 / math.sqrt(E)  # nn.Linear-style init range
    x = jax.random.normal(kx, (B, N, E), dtype=jnp.float32)
    w_qkv = jax.random.uniform(kqkv, (E, 3 * E), dtype=jnp.float32,
                               minval=-bound, maxval=bound)
    w_out = jax.random.uniform(kout, (E, E), dtype=jnp.float32,
                               minval=-bound, maxval=bound)

    y_ref = _reference(x, w_qkv, w_out, H)

    # Default path: bf16 MXU operands, f32 accumulation + f32 softmax (looser tolerance).
    y_bf16 = multi_head_self_attention(x, w_qkv, w_out, num_heads=H)
    y_bf16 = jax.block_until_ready(y_bf16)
    assert y_bf16.shape == (B, N, E)
    assert jnp.allclose(y_bf16, y_ref, atol=5e-2, rtol=5e-2), "bf16 path mismatch vs reference"

    # Strict f32 path: tight tolerance (only the EUP approx reciprocal differs from exact).
    y_f32 = multi_head_self_attention(x, w_qkv, w_out, num_heads=H, mxu_dtype=jnp.float32)
    y_f32 = jax.block_until_ready(y_f32)
    assert jnp.allclose(y_f32, y_ref, atol=5e-3, rtol=5e-3), "f32 path mismatch vs reference"

    print("KERNEL_OK")
</pallas_src>

<mosaic_0001>
module attributes {stable_mosaic.version = 11 : i64} {
  func.func @_mha_kernel(%arg0: i32, %arg1: i32, %arg2: memref<1x8x32xbf16, #tpu.memory_space<vmem>>, %arg3: memref<1x32x384xbf16, #tpu.memory_space<vmem>>, %arg4: memref<1x128x32xbf16, #tpu.memory_space<vmem>>, %arg5: memref<1x8x32xf32, #tpu.memory_space<vmem>>, %arg6: memref<1x8x32xf32, #tpu.memory_space<vmem>>) attributes {dimension_semantics = [#tpu.dimension_semantics<parallel>, #tpu.dimension_semantics<arbitrary>], iteration_bounds = array<i64: 2, 4>, scalar_prefetch = 0 : i64, scratch_operands = 1 : i64, tpu.core_type = #tpu.core_type<tc>, window_params = [{transform_indices = @transform_0, window_bounds = array<i64: 1, 8, 32>}, {transform_indices = @transform_1, window_bounds = array<i64: 1, 32, 384>}, {transform_indices = @transform_2, window_bounds = array<i64: 1, 128, 32>}, {transform_indices = @transform_3, window_bounds = array<i64: 1, 8, 32>}]} {
    %c0_i32 = arith.constant 0 : i32
    %0 = arith.cmpi eq, %arg1, %c0_i32 : i32
    %1 = arith.extui %0 : i1 to i32
    %c0_i32_0 = arith.constant 0 : i32
    %2 = arith.cmpi ne, %1, %c0_i32_0 : i32
    scf.if %2 {
      %cst_21 = arith.constant 0.000000e+00 : f32
      %42 = vector.broadcast %cst_21 : f32 to vector<1x8x32xf32>
      %c0_22 = arith.constant 0 : index
      %c0_23 = arith.constant 0 : index
      %c0_24 = arith.constant 0 : index
      %43 = vector.load %arg6[%c0_22, %c0_23, %c0_24] : memref<1x8x32xf32, #tpu.memory_space<vmem>>, vector<1x8x32xf32>
      tpu.vector_store %arg6[%c0_22, %c0_23, %c0_24], %42 {strides = array<i32>} : memref<1x8x32xf32, #tpu.memory_space<vmem>>, vector<1x8x32xf32>,
    } else {
    }
    %c0 = arith.constant 0 : index
    %c0_1 = arith.constant 0 : index
    %c0_2 = arith.constant 0 : index
    %3 = vector.load %arg2[%c0, %c0_1, %c0_2] : memref<1x8x32xbf16, #tpu.memory_space<vmem>>, vector<1x8x32xbf16>
    %4 = vector.shape_cast %3 : vector<1x8x32xbf16> to vector<8x32xbf16>
    %c0_3 = arith.constant 0 : index
    %c0_4 = arith.constant 0 : index
    %c0_5 = arith.constant 0 : index
    %5 = vector.load %arg3[%c0_3, %c0_4, %c0_5] : memref<1x32x384xbf16, #tpu.memory_space<vmem>>, vector<1x32x384xbf16>
    %6 = vector.shape_cast %5 : vector<1x32x384xbf16> to vector<32x384xbf16>
    %cst = arith.constant dense<0.000000e+00> : vector<8x384xf32>
    %7 = tpu.matmul %4, %6, %cst {dimension_numbers = #tpu.dot_dimension_numbers<[1], [0], [0], [1], [0, 0, 1, 1], [], []>} : vector<8x32xbf16>, vector<32x384xbf16>, vector<8x384xf32> -> vector<8x384xf32>
    %8 = vector.extract_strided_slice %7 {offsets = [0, 0], sizes = [8, 128], strides = [1, 1]} : vector<8x384xf32> to vector<8x128xf32>
    %9 = arith.truncf %8 : vector<8x128xf32> to vector<8x128xbf16>
    %10 = vector.shape_cast %9 : vector<8x128xbf16> to vector<1x8x128xbf16>
    %11 = vector.extract_strided_slice %7 {offsets = [0, 128], sizes = [8, 128], strides = [1, 1]} : vector<8x384xf32> to vector<8x128xf32>
    %12 = arith.truncf %11 : vector<8x128xf32> to vector<8x128xbf16>
    %13 = vector.shape_cast %12 : vector<8x128xbf16> to vector<1x8x128xbf16>
    %14 = vector.extract_strided_slice %7 {offsets = [0, 256], sizes = [8, 128], strides = [1, 1]} : vector<8x384xf32> to vector<8x128xf32>
    %15 = arith.truncf %14 : vector<8x128xf32> to vector<8x128xbf16>
    %16 = vector.shape_cast %15 : vector<8x128xbf16> to vector<1x8x128xbf16>
    "tpu.trace_start"() <{level = 10 : i32, message = "bnd,bmd->bnm"}> : () -> ()
    %cst_6 = arith.constant dense<0.000000e+00> : vector<1x8x8xf32>
    %17 = tpu.matmul %10, %13, %cst_6 {dimension_numbers = #tpu.dot_dimension_numbers<[2], [2], [1], [1], [0, 0, 0, 1, 1, 1], [0], [0]>} : vector<1x8x128xbf16>, vector<1x8x128xbf16>, vector<1x8x8xf32> -> vector<1x8x8xf32>
    "tpu.trace_stop"() : () -> ()
    %cst_7 = arith.constant dense<0xFF800000> : vector<1x8xf32>
    %18 = vector.multi_reduction <maximumf>, %17, %cst_7 [2] : vector<1x8x8xf32> to vector<1x8xf32>
    %19 = vector.shape_cast %18 : vector<1x8xf32> to vector<1x8x1xf32>
    %20 = vector.broadcast %19 : vector<1x8x1xf32> to vector<1x8x8xf32>
    %21 = arith.subf %17, %20 : vector<1x8x8xf32>
    %22 = math.exp %21 : vector<1x8x8xf32>
    %cst_8 = arith.constant dense<0.000000e+00> : vector<1x8xf32>
    %23 = vector.multi_reduction <add>, %22, %cst_8 [2] : vector<1x8x8xf32> to vector<1x8xf32>
    %24 = vector.shape_cast %23 : vector<1x8xf32> to vector<1x8x1xf32>
    %25 = arith.truncf %22 : vector<1x8x8xf32> to vector<1x8x8xbf16>
    "tpu.trace_start"() <{level = 10 : i32, message = "bnm,bmd->bnd"}> : () -> ()
    %cst_9 = arith.constant dense<0.000000e+00> : vector<1x8x128xf32>
    %26 = tpu.matmul %25, %16, %cst_9 {dimension_numbers = #tpu.dot_dimension_numbers<[2], [1], [1], [2], [0, 0, 0, 1, 1, 2], [0], [0]>} : vector<1x8x8xbf16>, vector<1x8x128xbf16>, vector<1x8x128xf32> -> vector<1x8x128xf32>
    "tpu.trace_stop"() : () -> ()
    %27 = tpu.reciprocal %24 {approx = true} : vector<1x8x1xf32> -> vector<1x8x1xf32>
    %28 = vector.broadcast %27 : vector<1x8x1xf32> to vector<1x8x128xf32>
    %29 = arith.mulf %26, %28 : vector<1x8x128xf32>
    %30 = arith.truncf %29 : vector<1x8x128xf32> to vector<1x8x128xbf16>
    %31 = vector.shape_cast %30 : vector<1x8x128xbf16> to vector<8x128xbf16>
    %c0_10 = arith.constant 0 : index
    %c0_11 = arith.constant 0 : index
    %c0_12 = arith.constant 0 : index
    %32 = vector.load %arg4[%c0_10, %c0_11, %c0_12] : memref<1x128x32xbf16, #tpu.memory_space<vmem>>, vector<1x128x32xbf16>
    %33 = vector.shape_cast %32 : vector<1x128x32xbf16> to vector<128x32xbf16>
    %cst_13 = arith.constant dense<0.000000e+00> : vector<8x32xf32>
    %34 = tpu.matmul %31, %33, %cst_13 {dimension_numbers = #tpu.dot_dimension_numbers<[1], [0], [0], [1], [0, 0, 1, 1], [], []>} : vector<8x128xbf16>, vector<128x32xbf16>, vector<8x32xf32> -> vector<8x32xf32>
    %c0_14 = arith.constant 0 : index
    %c0_15 = arith.constant 0 : index
    %c0_16 = arith.constant 0 : index
    %35 = vector.load %arg6[%c0_14, %c0_15, %c0_16] : memref<1x8x32xf32, #tpu.memory_space<vmem>>, vector<1x8x32xf32>
    %36 = vector.shape_cast %34 : vector<8x32xf32> to vector<1x8x32xf32>
    %37 = arith.addf %35, %36 : vector<1x8x32xf32>
    %c0_17 = arith.constant 0 : index
    %c0_18 = arith.constant 0 : index
    %c0_19 = arith.constant 0 : index
    %38 = vector.load %arg6[%c0_17, %c0_18, %c0_19] : memref<1x8x32xf32, #tpu.memory_space<vmem>>, vector<1x8x32xf32>
    tpu.vector_store %arg6[%c0_17, %c0_18, %c0_19], %37 {strides = array<i32>} : memref<1x8x32xf32, #tpu.memory_space<vmem>>, vector<1x8x32xf32>,
    %c3_i32 = arith.constant 3 : i32
    %39 = arith.cmpi eq, %arg1, %c3_i32 : i32
    %40 = arith.extui %39 : i1 to i32
    %c0_i32_20 = arith.constant 0 : i32
    %41 = arith.cmpi ne, %40, %c0_i32_20 : i32
    scf.if %41 {
      %c0_21 = arith.constant 0 : index
      %c0_22 = arith.constant 0 : index
      %c0_23 = arith.constant 0 : index
      %42 = vector.load %arg6[%c0_21, %c0_22, %c0_23] : memref<1x8x32xf32, #tpu.memory_space<vmem>>, vector<1x8x32xf32>
      %c0_24 = arith.constant 0 : index
      %c0_25 = arith.constant 0 : index
      %c0_26 = arith.constant 0 : index
      %43 = vector.load %arg5[%c0_24, %c0_25, %c0_26] : memref<1x8x32xf32, #tpu.memory_space<vmem>>, vector<1x8x32xf32>
      tpu.vector_store %arg5[%c0_24, %c0_25, %c0_26], %42 {strides = array<i32>} : memref<1x8x32xf32, #tpu.memory_space<vmem>>, vector<1x8x32xf32>,
    } else {
    }
    return
  }
  func.func @transform_0(%arg0: i32, %arg1: i32) -> (i32, i32, i32) {
    %c0_i32 = arith.constant 0 : i32
    %c0_i32_0 = arith.constant 0 : i32
    %c0_i32_1 = arith.constant 0 : i32
    return %arg0, %c0_i32, %c0_i32_0 : i32, i32, i32
  }
  func.func @transform_1(%arg0: i32, %arg1: i32) -> (i32, i32, i32) {
    %c0_i32 = arith.constant 0 : i32
    %c0_i32_0 = arith.constant 0 : i32
    %c0_i32_1 = arith.constant 0 : i32
    return %arg1, %c0_i32, %c0_i32_0 : i32, i32, i32
  }
  func.func @transform_2(%arg0: i32, %arg1: i32) -> (i32, i32, i32) {
    %c0_i32 = arith.constant 0 : i32
    %c0_i32_0 = arith.constant 0 : i32
    %c0_i32_1 = arith.constant 0 : i32
    return %arg1, %c0_i32, %c0_i32_0 : i32, i32, i32
  }
  func.func @transform_3(%arg0: i32, %arg1: i32) -> (i32, i32, i32) {
    %c0_i32 = arith.constant 0 : i32
    %c0_i32_0 = arith.constant 0 : i32
    %c0_i32_1 = arith.constant 0 : i32
    return %arg0, %c0_i32, %c0_i32_0 : i32, i32, i32
  }
}

</mosaic_0001>

<bundles_post_ra>
// kernel: tpu_custom_call.1
= control target key start
LH: loop header
LB: loop body
LE: loop exit
PB: predicated region body
PF: predicated region fallthrough
CT: control target
= control target key end

     0   :  { %8 = vsyncpa [#allocation4], 0  ;;  %s1155_s0 = inlined_call_operand.vmem [shape: bf16[2,8,32], index: 0, kind: input, shape index: {}]   ;;  %s1156_s1 = inlined_call_operand.vmem [shape: bf16[4,32,384], index: 1, kind: input, shape index: {}]   ;;  %s1157_s2 = inlined_call_operand.vmem [shape: bf16[4,128,32], index: 2, kind: input, shape index: {}]   ;;  %s1158_s3 = inlined_call_operand.hbm [shape: f32[2,8,32], index: 3, kind: output, shape index: {}]  }
   0x1   :  { %10 = vsyncpa [#allocation4 + $0x1], 0  ;;  %s981_s12 = smov 0   ;;  %s983_s13 = smov 0  }
   0x2   :  { %s985_s14 = smov 0   ;;  %s987_s15 = smov 0  }
   0x3   :  { %s989_s16 = smov 0   ;;  %s991_s17 = smov 0  }
   0x4   :  { %s993_s18 = smov 0   ;;  %s995_s19 = smov 0  }
   0x5 LB: > { %s676_s20 = sadd.s32 4294967295, %s954_s19   ;;  %s677_s21 = sadd.s32 4294967294, %s954_s19   ;;  %s954_s19 = sphi %s995_s19, %s16_s19   ;;  %s950_s18 = sphi %s993_s18, %s1174_s18   ;;  %s946_s17 = sphi %s991_s17, %s1173_s17   ;;  %s942_s16 = sphi %s989_s16, %s1172_s16   ;;  %s938_s15 = sphi %s987_s15, %s1171_s15   ;;  %s934_s14 = sphi %s985_s14, %s1170_s14   ;;  %s930_s13 = sphi %s983_s13, %s1169_s13   ;;  %s926_s12 = sphi %s981_s12, %s1168_s12  }
   0x6   : > { %s25_s22 = sadd.s32 1, %s946_s17  ;;  %s28_s23 = sadd.s32 1, %s950_s18 }
   0x7   : > { %p26_p0 = scmp.ge.s32.totalorder %s25_s22, 4  ;;  %p123_p1 = scmp.ne.s32.totalorder %s934_s14, %s930_s13 }
   0x8   : > { %p124_p2 = scmp.eq.s32.totalorder %s676_s20, 7  ;;  %p129_p4 = scmp.ne.s32.totalorder %s930_s13, %s926_s12 }
   0x9   : > { %s1176_s22 = smov (%p26_p0, %s25_s22), 0  ;;  %s1178_s23 = smov (!%p26_p0, %s28_s23), %s950_s18 }
   0xa   : > { %1161 = sst [smem:[#allocation6_spill]] %s1176_s22  ;;  %p1030_p3 = por %p124_p2, %p123_p1 }
   0xb   : > { %p30_p5 = scmp.ge.s32.totalorder %s1178_s23, 2  ;;  %p130_p6 = scmp.eq.s32.totalorder %s677_s21, 7 }
   0xc   : > { %p680_p7 = scmp.ge.s32.totalorder %s954_s19, 1  ;;  %p171_p8 = scmp.lt.s32.totalorder %s954_s19, 9 }
   0xd   : > { %s1180_s23 = smov (%p30_p5, %s1178_s23), 0  ;;  %p1040_p9 = por %p130_p6, %p129_p4 }
   0xe   : > { %1163 = sst [smem:[#allocation7_spill]] %s1180_s23  ;;  %p172_p10 = pnand %p680_p7, %p171_p8 }
   0xf   : > { %s110_s26 = ssub.s32 %s950_s18, %s1180_s23  ;;  %s113_s27 = sadd.s32 1, %s934_s14 }
  0x10   : > { %p111_p11 = scmp.eq.s32.totalorder %s110_s26, 0  ;;  %175 = sbr.rel (%p172_p10) target bundleno = 1020 (0x3fc), region = 32 }
  0x11   : > { %s1160_s29 = sand.u32 (!%p172_p10), 1, %s930_s13   ;;  %p204_p12 = scmp.lt.s32.totalorder (!%p172_p10), %s942_s16, 1 }
  0x12   : > { %s1048_s28 = scalar_select %p111_p11, %s934_s14, %s113_s27  }
  0x13   : > { %s1054_s30 = sshll.u32 (!%p172_p10), %s1160_s29, 3  ;;  %p208_p13 = scmp.lt.s32.totalorder (!%p172_p10), %s938_s15, 3 }
  0x14   : > { %s203_s22 = scalar_lea.vmem (!%p172_p10), [#allocation3], %s1054_s30  ;;  %p686_p0 = scmp.ne.s32.totalorder (!%p172_p10), %s938_s15, 0 }
  0x15   : > { %s205_s4 = scalar_select %p204_p12, %s942_s16, 1 }
  0x16   : > { %s209_s5 = scalar_select %p208_p13, %s938_s15, 3 }
  0x17   : > { %s682_s6 = sshll.u32 %s205_s4, 2  ;;  %222 = sbr.rel (%p686_p0) target bundleno = 30 (0x1e), region = 36 }
  0x18   : > { %s207_s9 = scalar_lea.vmem %s1155_s0, %s682_s6  ;;  %s766_s10 = smul.u32 48, %s209_s5 }
  0x19   : > { %s709_s11 = sshll.u32 %s209_s5, 6 }
  0x1a   : > { %s212_s26 = scalar_lea.vmem %s1156_s1, %s766_s10  ;;  %s1068_s29 = scalar_lea.vmem %s1157_s2, %s709_s11 }
  0x1c   : > { %vm223_vm0 = vcmask 261120   ;;  %v956_v0 = vmov 0.0  }
  0x1d   : > { %224 = vst.msk [vmem:[#allocation2] sm:$0xff] %vm223_vm0, %v956_v0 }
  0x1e PF: > { %v842_v1 = vld [vmem:[%s212_s26 + $0x1c] ss:$12 sps:$4 sm:$0xff]   ;;  %v844_v2 = vld [vmem:[%s212_s26 + $0x18] ss:$12 sps:$4 sm:$0xff]   ;;  %v957_v3 = vmov 0   ;;  %v958_v5 = vmov 0.0  }
  0x1f   : > { %302 = vmatprep.mubr.bf16.mxu1 %v957_v3  ;;  %282 = vmatprep.subr.bf16.mxu1 %v842_v1  ;;  %v845_v4 = vld [vmem:[%s212_s26 + $0x4] ss:$12 sps:$4 sm:$0xff]   ;;  %v847_v6 = vld [vmem:[%s212_s26] ss:$12 sps:$4 sm:$0xff]   ;;  %vm959_vm1 = vmmov 0   ;;  %vm266_vm2 = vcmask 261120  }
  0x20   : > { %746 = vmatprep.subr.bf16.mxu0 %v958_v5  ;;  %283 = vmatpush1.bf16.msra.mxu1 %v844_v2  ;;  %v225_v7 = vld [vmem:[%s207_s9] sm:$0xf]  ;;  %v849_v9 = vld [vmem:[%s212_s26 + $0x8] ss:$12 sps:$4 sm:$0xff]   ;;  %vm408_vm3 = vcmask 1043456   ;;  %vm394_vm4 = vcmask 64512  }
  0x21   : > { %762 = vmatprep.mubr.msk.bf16.mxu0 %vm959_vm1, %v958_v5  ;;  %284 = vmatprep.subr.bf16.mxu1 %v845_v4  ;;  %v848_v8 = vld [vmem:[%s212_s26 + $0x20] ss:$12 sps:$4 sm:$0xff]   ;;  %v850_v33 = vld [vmem:[%s1068_s29 + $0x38] sm:$0xff]   ;;  %v851_v34 = vld [vmem:[%s1068_s29 + $0x30] sm:$0xff]   ;;  %p704_p1 = scmp.ne.s32.totalorder %s938_s15, 3 }
  0x22   : > { %747 = vmatpush3.bf16.msra.mxu0 %v850_v33  ;;  %v852_v35 = vld [vmem:[%s1068_s29 + $0x28] sm:$0xff]   ;;  %v853_v36 = vld [vmem:[%s1068_s29 + $0x20] sm:$0xff]   ;;  %v854_v37 = vld [vmem:[%s1068_s29 + $0x18] sm:$0xff]  }
  0x23   : > { %748 = vmatprep.subr.bf16.mxu0 %v958_v5  ;;  %v855_v38 = vld [vmem:[%s1068_s29 + $0x10] sm:$0xff]   ;;  %v856_v39 = vld [vmem:[%s1068_s29 + $0x8] sm:$0xff]   ;;  %v857_v40 = vld [vmem:[%s1068_s29] sm:$0xff]  }
  0x24   : > { %285 = vmatpush1.bf16.msra.mxu1 %v847_v6  ;;  %v559_v49 = vld [vmem:[#allocation2] sm:$0xff] }
  0x25   : > { %726 = vmatprep.subr.bf16.mxu1 %v958_v5 }
  0x26   : > { %749 = vmatpush3.bf16.msra.mxu0 %v851_v34 }
  0x27   : > { %693 = vmatmul.mubr.msk.bf16.vlgmr.msra.gmra.mxu1 %vm266_vm2, %v225_v7  ;;  %750 = vmatprep.subr.bf16.mxu0 %v958_v5 }
  0x28   : > { %727 = vmatpush3.bf16.msra.mxu1 %v848_v8  ;;  %730 = vmatprep.mubr.msk.bf16.mxu1 %vm959_vm1, %v958_v5 }
  0x29   : > { %728 = vmatprep.subr.bf16.mxu1 %v958_v5 }
  0x2a   : > { %751 = vmatpush3.bf16.msra.mxu0 %v852_v35 }
  0x2b   : > { %752 = vmatprep.subr.bf16.mxu0 %v958_v5 }
  0x2c   : > { %729 = vmatpush3.bf16.msra.mxu1 %v849_v9 }
  0x2d   : > { %734 = vmatprep.subr.bf16.mxu1 %v958_v5 }
  0x2e   : > { %753 = vmatpush3.bf16.msra.mxu0 %v853_v36 }
  0x2f   : > { %731 = vmatmul.mubr.msk.bf16.vlgmr.msra.gmra.mxu1 %vm266_vm2, %v225_v7  ;;  %754 = vmatprep.subr.bf16.mxu0 %v958_v5 }
  0x30   : > { %736 = vmatprep.mubr.msk.bf16.mxu1 %vm959_vm1, %v958_v5 }
  0x32   : > { %755 = vmatpush3.bf16.msra.mxu0 %v854_v37 }
  0x33   : > { %756 = vmatprep.subr.bf16.mxu0 %v958_v5 }
  0x36   : > { %757 = vmatpush3.bf16.msra.mxu0 %v855_v38 }
  0x37   : > { %758 = vmatprep.subr.bf16.mxu0 %v958_v5 }
  0x3a   : > { %759 = vmatpush3.bf16.msra.mxu0 %v856_v39 }
  0x3b   : > { %760 = vmatprep.subr.bf16.mxu0 %v958_v5 }
  0x3e   : > { %761 = vmatpush3.bf16.msra.mxu0 %v857_v40 }
  0xe7   : > { %v304_v10 = vpop.f32.mrf.mxu1 }
  0xe8   : > { %v351_v17 = vpack.c.bf16 %v304_v10, %v304_v10 }
  0xe9   : > { %v306_v11 = vpop.f32.mrf.mxu1 }
  0xea   : > { %v352_v12 = vpack.c.bf16 %v306_v11, %v306_v11 }
  0xeb   : > { %v308_v13 = vpop.f32.mrf.mxu1 }
  0xec   : > { %735 = vmatpush3.bf16.xpose.msra.mxu1 %v352_v12 }
  0xed   : > { %v309_v14 = vpop.f32.mrf.mxu1  ;;  %740 = vmatprep.subr.bf16.mxu1 %v958_v5 }
  0xef   : > { %v345_v15 = vpop.f32.mrf.mxu1 }
  0xf0   : > { %v353_v16 = vpack.c.bf16 %v345_v15, %v345_v15 }
  0xf1   : > { %v732_v18 = vpop.f32.mrf.mxu1 }
  0xf2   : > { %v410_v19 = vsel %vm408_vm3, %v353_v16, 0 }
  0xf3   : > { %737 = vmatmul.mubr.bf16.vlgmr.msra.gmra.mxu1 %v351_v17  ;;  %v348_v20 = vpop.f32.mrf.mxu1 }
  0xf4   : > { %741 = vmatpush3.bf16.msra.mxu1 %v410_v19  ;;  %742 = vmatprep.mubr.msk.bf16.mxu1 %vm959_vm1, %v958_v5 }
  0xf5   : > { %v733_v21 = vpop.f32.mrf.mxu1 }
 0x1b3   : > { %v388_v22 = vpop.f32.mrf.mxu1 }
 0x1b4   : > { %v395_v23 = vsel %vm394_vm4, %v388_v22, -inf }
 0x1b5   : > { %396 = vmax.xlane.f32.xlu0 %v395_v23  ;;  %v738_v24 = vpop.f32.mrf.mxu1 }
 0x1b7   : > { %v391_v25 = vpop.f32.mrf.mxu1 }
 0x1b9   : > { %v739_v26 = vpop.f32.mrf.mxu1 }
 0x23e   : > { %v397_v27 = vpop.xlane.xlu0 %396 }
 0x23f   : > { %v398_v28 = vsub.f32 %v388_v22, %v397_v27 }
 0x241   : > { %v399_v29 = vmul.f32 1.442695, %v398_v28 }
 0x243   : > { %858 = vpow2.f32 %v399_v29 }
 0x250   : > { %v859_v30 = vpop.eup %858 }
 0x251   : > { %v401_v31 = vsel %vm394_vm4, %v859_v30, 0.0  ;;  %v404_v32 = vpack.c.bf16 %v859_v30, %v859_v30 }
 0x252   : > { %402 = vadd.xlane.f32.xlu0 %v401_v31 }
 0x253   : > { %743 = vmatmul.mubr.msk.bf16.vlgmr.msra.gmra.mxu1 %vm394_vm4, %v404_v32 }
 0x2db   : > { %v403_v41 = vpop.xlane.xlu0 %402 }
 0x2dc   : > { %860 = vrcp.f32 %v403_v41 }
 0x2e9   : > { %v861_v42 = vpop.eup %860 }
 0x313   : > { %v446_v43 = vpop.f32.mrf.mxu1 }
 0x314   : > { %v453_v44 = vmul.f32 %v861_v42, %v446_v43 }
 0x315   : > { %v744_v45 = vpop.f32.mrf.mxu1 }
 0x316   : > { %v454_v46 = vpack.c.bf16 %v453_v44, %v453_v44 }
 0x317   : > { %v449_v47 = vpop.f32.mrf.mxu1 }
 0x318   : > { %763 = vmatmul.mubr.bf16.vlgmr.msra.gmra.mxu0 %v454_v46 }
 0x319   : > { %v745_v48 = vpop.f32.mrf.mxu1 }
 0x3d8   : > { %v553_v50 = vpop.f32.mrf.mxu0 }
 0x3d9   : > { %v560_v51 = vadd.f32 %v559_v49, %v553_v50 }
 0x3da   : > { %v764_v52 = vpop.f32.mrf.mxu0  ;;  %565 = sbr.rel (%p704_p1) target bundleno = 996 (0x3e4), region = 40 }
 0x3db   : > { %561 = vst.msk [vmem:[#allocation2] sm:$0xff] %vm266_vm2, %v560_v51 }
 0x3dc   : > { %v556_v53 = vpop.f32.mrf.mxu0 }
 0x3de   : > { %v765_v54 = vpop.f32.mrf.mxu0 }
 0x3e2   : > { %v566_v55 = vld [vmem:[#allocation2] sm:$0xff] }
 0x3e3   : > { %567 = vst.msk [vmem:[%s203_s22] sm:$0xff] %vm266_vm2, %v566_v55 }
 0x3e4 PF: > { %s706_s23 = sshll.u32 %s942_s16, 7  ;;  %s582_s6 = sshll.u32 %s203_s22, 4  ;;  %s583_s6 = int_to_ptr.vmem [resolvable:$true] %s582_s6 }
 0x3e5   : > { %s580_s5 = scalar_lea.hbm %s1158_s3, %s706_s23  ;;  %s1165_s15 = sand.u32 1, %s930_s13  }
 0x3e6   : > { %s569_s7 = scalar_lea.sflag [#allocation4], %s1165_s15  ;;  %s862_s8 = scalar_lea.vmem %s583_s6, 128 }
 0x3e7   : > { %p863_p2 = scmp.ne.s32.totalorder %s583_s6, %s862_s8  ;;  %s960_s9 = smov [#allocation3]  }
 0x3e8   : > { %s866_s10 = sshll.u32 %s960_s9, 4  ;;  %s867_s10 = int_to_ptr.vmem [resolvable:$false] %s866_s10 }
 0x3e9   : > { %p864_p4 = pnand %p863_p2, %p1030_p3  ;;  %s868_s11 = scalar_lea.vmem %s867_s10, 256 }
 0x3ea   : > { %p869_p6 = scmp.lt.s32.totalorder %s583_s6, %s867_s10  ;;  %p870_p7 = scmp.lt.s32.totalorder %s868_s11, %s862_s8 }
 0x3eb   : > { %p865_p5 = pneg %p864_p4 }
 0x3ec   : > { %p871_p8 = por %p870_p7, %p869_p6 }
 0x3ee   : > { %p872_p10 = pnand %p871_p8, %p865_p5 }
 0x3f0   : > { %875 = shalt.err (!%p872_p10)
}
 0x3f1   : > { %s876_s16 = scalar_lea.hbm %s580_s5, 128  ;;  %s880_s20 = scalar_lea.hbm %s1158_s3, 256 }
 0x3f2   : > { %p877_p11 = scmp.ne.s32.totalorder %s580_s5, %s876_s16  ;;  %p881_p0 = scmp.lt.s32.totalorder %s580_s5, %s1158_s3 }
 0x3f3   : > { %p882_p1 = scmp.lt.s32.totalorder %s880_s20, %s876_s16 }
 0x3f4   : > { %p878_p12 = pnand %p877_p11, %p1030_p3 }
 0x3f5   : > { %p883_p2 = por %p882_p1, %p881_p0 }
 0x3f6   : > { %p879_p13 = pneg %p878_p12 }
 0x3f8   : > { %p884_p4 = pnand %p883_p2, %p879_p13 }
 0x3fa   : > { %887 = shalt.err (!%p884_p4)
}
 0x3fb   : > { %767 = dma.vmem_to_hbm [thread:$0]  (%p1030_p3), %s583_s6, 128, %s580_s5, %s569_s7  }
 0x3fc PF: > { %p773_p5 = scmp.ge.s32.totalorder %s954_s19, 2  ;;  %s594_s27 = sand.u32 1, %s926_s12  }
 0x3fd   : > { %s595_s23 = scalar_lea.sflag [#allocation4], %s594_s27 }
 0x3fe   : > { %p770_p6 = pnand %p773_p5, %p1040_p9 }
 0x400   : > { %p771_p7 = pneg %p770_p6 }
 0x402   : > { %921 = dma.done.wait (%p771_p7), %s595_s23, 128  }
 0x403   : > { %923 = vsyncadd (%p771_p7), %s595_s23, 4294967168  ;;  %s16_s19 = sadd.s32 1, %s954_s19   ;;  %s1166_s24 = sld [smem:[#allocation6_spill]] }
 0x404   : > { %p13_p8 = scmp.ge.s32.totalorder %s16_s19, 10   ;;  %s1167_s29 = sld [smem:[#allocation7_spill]] }
 0x405   : > { %s1168_s12 = smov %s930_s13  ;;  %s1169_s13 = smov %s934_s14 }
 0x406   : > { %s1170_s14 = smov %s1048_s28  ;;  %s1171_s15 = smov %s946_s17 }
 0x407   : > { %s1172_s16 = smov %s950_s18  ;;  %15 = sbr.rel (!%p13_p8) target bundleno = 5 (0x5), region = 81 }
 0x409   : > { %s1173_s17 = smov %s1166_s24 }
 0x40a   : > { %s1174_s18 = smov %s1167_s29 }
 0x40c   :  { %600 = vsyncpa [#allocation4], 1 }
 0x40d   :  { %602 = vsyncpa [#allocation4 + $0x1], 1 }

</bundles_post_ra>
